<compile_context>
chip_gen: v5e
topology: v5e:2x2
jax: 0.10.0
libtpu: 0.0.40
codegen_flags: <defaults>
</compile_context>

<pallas_src>
from functools import partial

import jax
import jax.numpy as jnp
from jax import lax
from jax.experimental import pallas as pl
from jax.experimental.pallas import tpu as pltpu


# ----------------------------------------------------------------------------
# Pallas kernel: GRU encoder (torch gate order r,z,n) + CatLinear decoder
# ----------------------------------------------------------------------------
def gru_catfc_kernel(x_ref,        # (T*N, F)      time-major, flattened
                     w_enc_ref,    # (F+H, 3H)     rows 0..F-1 = W_i^T, rows F..F+H-1 = W_h^T
                     w_fc_ref,     # (H, O_pad)    decoder FC (lane-padded)
                     b_ref,        # (3, LPAD)     row0=[b_ir+b_hr,b_iz+b_hz,b_in], row1=[0,0,b_hn], row2=fc bias
                     out_ref,      # (N, O_pad)
                     *, T, N, F, H):
    G3 = 3 * H
    O_pad = out_ref.shape[1]

    # Hoisted input projection: one MXU pass covers all T timesteps; fused biases added once.
    bi = b_ref[0:1, :G3]
    gi = (jnp.dot(x_ref[...], w_enc_ref[:F, :], preferred_element_type=jnp.float32)
          + bi)                                                             # (T*N, 3H)

    wh = w_enc_ref[F:, :]                                                   # (H, 3H), loaded once
    # Hoist the bias broadcast out of the unrolled loop (no per-step broadcast_in_dim).
    bh = jnp.broadcast_to(b_ref[1:2, :G3], (N, G3))

    # Recurrence: fully unrolled (T is static/small); h stays register-resident.
    # TODO(synk): for large T switch to lax.fori_loop(..., unroll=4/8) with gi streamed from VMEM
    #             scratch to avoid vreg spills of the (T*N,3H) live value.
    h = jnp.zeros((N, H), jnp.float32)
    for t in range(T):
        gi_t = gi[t * N:(t + 1) * N, :]                                     # (N, 3H) static slice
        # TODO(synk): hold W_h weight-stationary in the MXU (pltpu.matmul_push_rhs/acc_lhs/pop)
        #             across the serial chain; kept as jnp.dot for cross-generation portability.
        gh = jnp.dot(h, wh, preferred_element_type=jnp.float32) + bh        # (N, 3H) single MXU push
        r = jax.nn.sigmoid(gi_t[:, :H] + gh[:, :H])
        z = jax.nn.sigmoid(gi_t[:, H:2 * H] + gh[:, H:2 * H])
        n = jnp.tanh(gi_t[:, 2 * H:] + r * gh[:, 2 * H:])                   # r*(h@W_hn + b_hn)
        h = (1.0 - z) * n + z * h

    # Decoder = CatLinear with input_views=1: concat is identity, dropout is identity (eval).
    # TODO(synk): training-mode dropout (nn.Dropout) intentionally omitted (eval semantics).
    bfc = b_ref[2:3, :O_pad]
    out_ref[...] = (jnp.dot(h, w_fc_ref[...], preferred_element_type=jnp.float32)
                    + bfc).astype(out_ref.dtype)


# ----------------------------------------------------------------------------
# Parameter construction (deterministic, torch-shaped) and wrapper
# ----------------------------------------------------------------------------
def init_params(key, feat_in, hidden, out_dims, fc_std=0.01):
    ks = jax.random.split(key, 6)
    bound = 1.0 / jnp.sqrt(hidden)
    p = {
        # torch.nn.GRU parameter shapes (gate order r, z, n along dim 0)
        "w_ih": jax.random.uniform(ks[0], (3 * hidden, feat_in), jnp.float32, -bound, bound),
        "w_hh": jax.random.uniform(ks[1], (3 * hidden, hidden), jnp.float32, -bound, bound),
        "b_ih": jax.random.uniform(ks[2], (3 * hidden,), jnp.float32, -bound, bound),
        "b_hh": jax.random.uniform(ks[3], (3 * hidden,), jnp.float32, -bound, bound),
        # CatLinear fc: weight init N(0, fc_std), bias = 0 (decoder_fc_bias)
        "fc_w": fc_std * jax.random.normal(ks[4], (out_dims, hidden), jnp.float32),
        "fc_b": jnp.zeros((out_dims,), jnp.float32),
    }
    return p


def encoder_decoder_forward(imgs_ntf, params):
    """EncoderDecoder.forward for dim()==3 inputs (N, T, F) -> outputs (N, output_dims)."""
    N, T, F = imgs_ntf.shape
    H = params["w_hh"].shape[1]
    O = params["fc_w"].shape[0]
    G3 = 3 * H
    O_pad = ((O + 127) // 128) * 128                     # lane-dense decoder output
    LPAD = max(((G3 + 127) // 128) * 128, O_pad)         # shared bias-pack lane width

    # Glue (wrapper-side layout plumbing, not compute):
    #   time-major + flatten so the kernel can hoist the input projection into one matmul.
    x2d = jnp.transpose(imgs_ntf, (1, 0, 2)).reshape(T * N, F).astype(jnp.float32)

    w_ih, w_hh = params["w_ih"], params["w_hh"]
    b_ih, b_hh = params["b_ih"], params["b_hh"]

    # Consolidated encoder weight operand: [W_i^T ; W_h^T], columns ordered r,z,n.
    w_enc = jnp.concatenate([w_ih.T, w_hh.T], axis=0).astype(jnp.float32)   # (F+H, 3H)

    b_ir, b_iz, b_in_ = b_ih[:H], b_ih[H:2 * H], b_ih[2 * H:]
    b_hr, b_hz, b_hn = b_hh[:H], b_hh[H:2 * H], b_hh[2 * H:]
    b_all = jnp.zeros((3, LPAD), jnp.float32)
    b_all = b_all.at[0, :G3].set(jnp.concatenate([b_ir + b_hr, b_iz + b_hz, b_in_]))
    b_all = b_all.at[1, 2 * H:G3].set(b_hn)
    b_all = b_all.at[2, :O].set(params["fc_b"])

    w_fc = jnp.zeros((H, O_pad), jnp.float32).at[:, :O].set(params["fc_w"].T)   # (H, O_pad)

    vmem = pl.BlockSpec(memory_space=pltpu.MemorySpace.VMEM)
    kernel = partial(gru_catfc_kernel, T=T, N=N, F=F, H=H)

    # Gridless single program: payload is <50 KB and N is tiny, so a grid would only add
    # per-step overhead.
    # TODO(synk): when N is large, add a batch-tile grid with
    #             compiler_params=pltpu.CompilerParams(dimension_semantics=("parallel",))
    #             so independent sequence tiles shard across v7x's 2 TensorCores, and budget
    #             the hoisted gi projection against v7x's smaller VMEM.
    out_pad = pl.pallas_call(
        kernel,
        out_shape=jax.ShapeDtypeStruct((N, O_pad), jnp.float32),
        in_specs=[vmem] * 4,
        out_specs=vmem,
    )(x2d, w_enc, w_fc, b_all)

    return out_pad[:, :O]


# Pure-JAX reference (mirrors torch.nn.GRU + Linear) used only for a sanity check.
def reference_forward(imgs_ntf, params):
    N, T, F = imgs_ntf.shape
    H = params["w_hh"].shape[1]
    w_ih, w_hh, b_ih, b_hh = params["w_ih"], params["w_hh"], params["b_ih"], params["b_hh"]

    def cell(h, x_t):
        gi = x_t @ w_ih.T + b_ih
        gh = h @ w_hh.T + b_hh
        i_r, i_z, i_n = gi[:, :H], gi[:, H:2 * H], gi[:, 2 * H:]
        h_r, h_z, h_n = gh[:, :H], gh[:, H:2 * H], gh[:, 2 * H:]
        r = jax.nn.sigmoid(i_r + h_r)
        z = jax.nn.sigmoid(i_z + h_z)
        n = jnp.tanh(i_n + r * h_n)
        h_new = (1.0 - z) * n + z * h
        return h_new, None

    h0 = jnp.zeros((N, H), jnp.float32)
    x_tnf = jnp.transpose(imgs_ntf, (1, 0, 2)).astype(jnp.float32)
    hT, _ = lax.scan(cell, h0, x_tnf)
    return hT @ params["fc_w"].T + params["fc_b"]


if __name__ == "__main__":
    # Small shapes: batch N=2, sequence T=8, input feature F=32, hidden/feat_dim=32, output_dims=40
    N, T, F, H, O = 2, 8, 32, 32, 40

    key = jax.random.PRNGKey(0)
    k_x, k_p = jax.random.split(key)
    imgs = jax.random.normal(k_x, (N, T, F), jnp.float32)     # dim()==3 path of forward()
    params = init_params(k_p, F, H, O, fc_std=0.01)

    out = encoder_decoder_forward(imgs, params)
    out = jax.block_until_ready(out)

    ref = jax.block_until_ready(reference_forward(imgs, params))
    assert out.shape == (N, O), out.shape
    assert jnp.allclose(out, ref, atol=1e-4, rtol=1e-4), float(jnp.max(jnp.abs(out - ref)))

    print("KERNEL_OK")
</pallas_src>

<mosaic_0001>
module attributes {stable_mosaic.version = 11 : i64} {
  func.func @gru_catfc_kernel(%arg0: memref<16x32xf32, #tpu.memory_space<vmem>>, %arg1: memref<64x96xf32, #tpu.memory_space<vmem>>, %arg2: memref<32x128xf32, #tpu.memory_space<vmem>>, %arg3: memref<3x128xf32, #tpu.memory_space<vmem>>, %arg4: memref<2x128xf32, #tpu.memory_space<vmem>>) attributes {dimension_semantics = [], scalar_prefetch = 0 : i64, scratch_operands = 0 : i64, tpu.core_type = #tpu.core_type<tc>} {
    %c0 = arith.constant 0 : index
    %c0_0 = arith.constant 0 : index
    %0 = vector.load %arg3[%c0, %c0_0] : memref<3x128xf32, #tpu.memory_space<vmem>>, vector<1x96xf32>
    %c0_1 = arith.constant 0 : index
    %c0_2 = arith.constant 0 : index
    %1 = vector.load %arg0[%c0_1, %c0_2] : memref<16x32xf32, #tpu.memory_space<vmem>>, vector<16x32xf32>
    %c0_3 = arith.constant 0 : index
    %c0_4 = arith.constant 0 : index
    %2 = vector.load %arg1[%c0_3, %c0_4] : memref<64x96xf32, #tpu.memory_space<vmem>>, vector<32x96xf32>
    %cst = arith.constant dense<0.000000e+00> : vector<16x96xf32>
    %3 = tpu.matmul %1, %2, %cst {dimension_numbers = #tpu.dot_dimension_numbers<[1], [0], [0], [1], [0, 0, 1, 1], [], []>} : vector<16x32xf32>, vector<32x96xf32>, vector<16x96xf32> -> vector<16x96xf32>
    %4 = vector.broadcast %0 : vector<1x96xf32> to vector<16x96xf32>
    %5 = arith.addf %3, %4 : vector<16x96xf32>
    %c32 = arith.constant 32 : index
    %c0_5 = arith.constant 0 : index
    %6 = vector.load %arg1[%c32, %c0_5] : memref<64x96xf32, #tpu.memory_space<vmem>>, vector<32x96xf32>
    %c1 = arith.constant 1 : index
    %c0_6 = arith.constant 0 : index
    %7 = vector.load %arg3[%c1, %c0_6] : memref<3x128xf32, #tpu.memory_space<vmem>>, vector<1x96xf32>
    %8 = vector.shape_cast %7 : vector<1x96xf32> to vector<1x96xf32>
    %9 = vector.broadcast %8 : vector<1x96xf32> to vector<2x96xf32>
    %cst_7 = arith.constant 0.000000e+00 : f32
    %10 = vector.broadcast %cst_7 : f32 to vector<2x32xf32>
    %11 = vector.extract_strided_slice %5 {offsets = [0, 0], sizes = [2, 96], strides = [1, 1]} : vector<16x96xf32> to vector<2x96xf32>
    %cst_8 = arith.constant dense<0.000000e+00> : vector<2x96xf32>
    %12 = tpu.matmul %10, %6, %cst_8 {dimension_numbers = #tpu.dot_dimension_numbers<[1], [0], [0], [1], [0, 0, 1, 1], [], []>} : vector<2x32xf32>, vector<32x96xf32>, vector<2x96xf32> -> vector<2x96xf32>
    %13 = arith.addf %12, %9 : vector<2x96xf32>
    %14 = vector.extract_strided_slice %11 {offsets = [0, 0], sizes = [2, 32], strides = [1, 1]} : vector<2x96xf32> to vector<2x32xf32>
    %15 = vector.extract_strided_slice %13 {offsets = [0, 0], sizes = [2, 32], strides = [1, 1]} : vector<2x96xf32> to vector<2x32xf32>
    %16 = arith.addf %14, %15 : vector<2x32xf32>
    %17 = arith.negf %16 : vector<2x32xf32>
    %18 = math.exp %17 : vector<2x32xf32>
    %cst_9 = arith.constant 1.000000e+00 : f32
    %19 = vector.broadcast %cst_9 : f32 to vector<2x32xf32>
    %20 = arith.addf %19, %18 : vector<2x32xf32>
    %21 = arith.divf %19, %20 : vector<2x32xf32>
    %22 = vector.extract_strided_slice %11 {offsets = [0, 32], sizes = [2, 32], strides = [1, 1]} : vector<2x96xf32> to vector<2x32xf32>
    %23 = vector.extract_strided_slice %13 {offsets = [0, 32], sizes = [2, 32], strides = [1, 1]} : vector<2x96xf32> to vector<2x32xf32>
    %24 = arith.addf %22, %23 : vector<2x32xf32>
    %25 = arith.negf %24 : vector<2x32xf32>
    %26 = math.exp %25 : vector<2x32xf32>
    %cst_10 = arith.constant 1.000000e+00 : f32
    %27 = vector.broadcast %cst_10 : f32 to vector<2x32xf32>
    %28 = arith.addf %27, %26 : vector<2x32xf32>
    %29 = arith.divf %27, %28 : vector<2x32xf32>
    %30 = vector.extract_strided_slice %11 {offsets = [0, 64], sizes = [2, 32], strides = [1, 1]} : vector<2x96xf32> to vector<2x32xf32>
    %31 = vector.extract_strided_slice %13 {offsets = [0, 64], sizes = [2, 32], strides = [1, 1]} : vector<2x96xf32> to vector<2x32xf32>
    %32 = arith.mulf %21, %31 : vector<2x32xf32>
    %33 = arith.addf %30, %32 : vector<2x32xf32>
    %34 = math.tanh %33 : vector<2x32xf32>
    %cst_11 = arith.constant 1.000000e+00 : f32
    %35 = vector.broadcast %cst_11 : f32 to vector<2x32xf32>
    %36 = arith.subf %35, %29 : vector<2x32xf32>
    %37 = arith.mulf %36, %34 : vector<2x32xf32>
    %38 = arith.mulf %29, %10 : vector<2x32xf32>
    %39 = arith.addf %37, %38 : vector<2x32xf32>
    %40 = vector.extract_strided_slice %5 {offsets = [2, 0], sizes = [2, 96], strides = [1, 1]} : vector<16x96xf32> to vector<2x96xf32>
    %cst_12 = arith.constant dense<0.000000e+00> : vector<2x96xf32>
    %41 = tpu.matmul %39, %6, %cst_12 {dimension_numbers = #tpu.dot_dimension_numbers<[1], [0], [0], [1], [0, 0, 1, 1], [], []>} : vector<2x32xf32>, vector<32x96xf32>, vector<2x96xf32> -> vector<2x96xf32>
    %42 = arith.addf %41, %9 : vector<2x96xf32>
    %43 = vector.extract_strided_slice %40 {offsets = [0, 0], sizes = [2, 32], strides = [1, 1]} : vector<2x96xf32> to vector<2x32xf32>
    %44 = vector.extract_strided_slice %42 {offsets = [0, 0], sizes = [2, 32], strides = [1, 1]} : vector<2x96xf32> to vector<2x32xf32>
    %45 = arith.addf %43, %44 : vector<2x32xf32>
    %46 = arith.negf %45 : vector<2x32xf32>
    %47 = math.exp %46 : vector<2x32xf32>
    %cst_13 = arith.constant 1.000000e+00 : f32
    %48 = vector.broadcast %cst_13 : f32 to vector<2x32xf32>
    %49 = arith.addf %48, %47 : vector<2x32xf32>
    %50 = arith.divf %48, %49 : vector<2x32xf32>
    %51 = vector.extract_strided_slice %40 {offsets = [0, 32], sizes = [2, 32], strides = [1, 1]} : vector<2x96xf32> to vector<2x32xf32>
    %52 = vector.extract_strided_slice %42 {offsets = [0, 32], sizes = [2, 32], strides = [1, 1]} : vector<2x96xf32> to vector<2x32xf32>
    %53 = arith.addf %51, %52 : vector<2x32xf32>
    %54 = arith.negf %53 : vector<2x32xf32>
    %55 = math.exp %54 : vector<2x32xf32>
    %cst_14 = arith.constant 1.000000e+00 : f32
    %56 = vector.broadcast %cst_14 : f32 to vector<2x32xf32>
    %57 = arith.addf %56, %55 : vector<2x32xf32>
    %58 = arith.divf %56, %57 : vector<2x32xf32>
    %59 = vector.extract_strided_slice %40 {offsets = [0, 64], sizes = [2, 32], strides = [1, 1]} : vector<2x96xf32> to vector<2x32xf32>
    %60 = vector.extract_strided_slice %42 {offsets = [0, 64], sizes = [2, 32], strides = [1, 1]} : vector<2x96xf32> to vector<2x32xf32>
    %61 = arith.mulf %50, %60 : vector<2x32xf32>
    %62 = arith.addf %59, %61 : vector<2x32xf32>
    %63 = math.tanh %62 : vector<2x32xf32>
    %cst_15 = arith.constant 1.000000e+00 : f32
    %64 = vector.broadcast %cst_15 : f32 to vector<2x32xf32>
    %65 = arith.subf %64, %58 : vector<2x32xf32>
    %66 = arith.mulf %65, %63 : vector<2x32xf32>
    %67 = arith.mulf %58, %39 : vector<2x32xf32>
    %68 = arith.addf %66, %67 : vector<2x32xf32>
    %69 = vector.extract_strided_slice %5 {offsets = [4, 0], sizes = [2, 96], strides = [1, 1]} : vector<16x96xf32> to vector<2x96xf32>
    %cst_16 = arith.constant dense<0.000000e+00> : vector<2x96xf32>
    %70 = tpu.matmul %68, %6, %cst_16 {dimension_numbers = #tpu.dot_dimension_numbers<[1], [0], [0], [1], [0, 0, 1, 1], [], []>} : vector<2x32xf32>, vector<32x96xf32>, vector<2x96xf32> -> vector<2x96xf32>
    %71 = arith.addf %70, %9 : vector<2x96xf32>
    %72 = vector.extract_strided_slice %69 {offsets = [0, 0], sizes = [2, 32], strides = [1, 1]} : vector<2x96xf32> to vector<2x32xf32>
    %73 = vector.extract_strided_slice %71 {offsets = [0, 0], sizes = [2, 32], strides = [1, 1]} : vector<2x96xf32> to vector<2x32xf32>
    %74 = arith.addf %72, %73 : vector<2x32xf32>
    %75 = arith.negf %74 : vector<2x32xf32>
    %76 = math.exp %75 : vector<2x32xf32>
    %cst_17 = arith.constant 1.000000e+00 : f32
    %77 = vector.broadcast %cst_17 : f32 to vector<2x32xf32>
    %78 = arith.addf %77, %76 : vector<2x32xf32>
    %79 = arith.divf %77, %78 : vector<2x32xf32>
    %80 = vector.extract_strided_slice %69 {offsets = [0, 32], sizes = [2, 32], strides = [1, 1]} : vector<2x96xf32> to vector<2x32xf32>
    %81 = vector.extract_strided_slice %71 {offsets = [0, 32], sizes = [2, 32], strides = [1, 1]} : vector<2x96xf32> to vector<2x32xf32>
    %82 = arith.addf %80, %81 : vector<2x32xf32>
    %83 = arith.negf %82 : vector<2x32xf32>
    %84 = math.exp %83 : vector<2x32xf32>
    %cst_18 = arith.constant 1.000000e+00 : f32
    %85 = vector.broadcast %cst_18 : f32 to vector<2x32xf32>
    %86 = arith.addf %85, %84 : vector<2x32xf32>
    %87 = arith.divf %85, %86 : vector<2x32xf32>
    %88 = vector.extract_strided_slice %69 {offsets = [0, 64], sizes = [2, 32], strides = [1, 1]} : vector<2x96xf32> to vector<2x32xf32>
    %89 = vector.extract_strided_slice %71 {offsets = [0, 64], sizes = [2, 32], strides = [1, 1]} : vector<2x96xf32> to vector<2x32xf32>
    %90 = arith.mulf %79, %89 : vector<2x32xf32>
    %91 = arith.addf %88, %90 : vector<2x32xf32>
    %92 = math.tanh %91 : vector<2x32xf32>
    %cst_19 = arith.constant 1.000000e+00 : f32
    %93 = vector.broadcast %cst_19 : f32 to vector<2x32xf32>
    %94 = arith.subf %93, %87 : vector<2x32xf32>
    %95 = arith.mulf %94, %92 : vector<2x32xf32>
    %96 = arith.mulf %87, %68 : vector<2x32xf32>
    %97 = arith.addf %95, %96 : vector<2x32xf32>
    %98 = vector.extract_strided_slice %5 {offsets = [6, 0], sizes = [2, 96], strides = [1, 1]} : vector<16x96xf32> to vector<2x96xf32>
    %cst_20 = arith.constant dense<0.000000e+00> : vector<2x96xf32>
    %99 = tpu.matmul %97, %6, %cst_20 {dimension_numbers = #tpu.dot_dimension_numbers<[1], [0], [0], [1], [0, 0, 1, 1], [], []>} : vector<2x32xf32>, vector<32x96xf32>, vector<2x96xf32> -> vector<2x96xf32>
    %100 = arith.addf %99, %9 : vector<2x96xf32>
    %101 = vector.extract_strided_slice %98 {offsets = [0, 0], sizes = [2, 32], strides = [1, 1]} : vector<2x96xf32> to vector<2x32xf32>
    %102 = vector.extract_strided_slice %100 {offsets = [0, 0], sizes = [2, 32], strides = [1, 1]} : vector<2x96xf32> to vector<2x32xf32>
    %103 = arith.addf %101, %102 : vector<2x32xf32>
    %104 = arith.negf %103 : vector<2x32xf32>
    %105 = math.exp %104 : vector<2x32xf32>
    %cst_21 = arith.constant 1.000000e+00 : f32
    %106 = vector.broadcast %cst_21 : f32 to vector<2x32xf32>
    %107 = arith.addf %106, %105 : vector<2x32xf32>
    %108 = arith.divf %106, %107 : vector<2x32xf32>
    %109 = vector.extract_strided_slice %98 {offsets = [0, 32], sizes = [2, 32], strides = [1, 1]} : vector<2x96xf32> to vector<2x32xf32>
    %110 = vector.extract_strided_slice %100 {offsets = [0, 32], sizes = [2, 32], strides = [1, 1]} : vector<2x96xf32> to vector<2x32xf32>
    %111 = arith.addf %109, %110 : vector<2x32xf32>
    %112 = arith.negf %111 : vector<2x32xf32>
    %113 = math.exp %112 : vector<2x32xf32>
    %cst_22 = arith.constant 1.000000e+00 : f32
    %114 = vector.broadcast %cst_22 : f32 to vector<2x32xf32>
    %115 = arith.addf %114, %113 : vector<2x32xf32>
    %116 = arith.divf %114, %115 : vector<2x32xf32>
    %117 = vector.extract_strided_slice %98 {offsets = [0, 64], sizes = [2, 32], strides = [1, 1]} : vector<2x96xf32> to vector<2x32xf32>
    %118 = vector.extract_strided_slice %100 {offsets = [0, 64], sizes = [2, 32], strides = [1, 1]} : vector<2x96xf32> to vector<2x32xf32>
    %119 = arith.mulf %108, %118 : vector<2x32xf32>
    %120 = arith.addf %117, %119 : vector<2x32xf32>
    %121 = math.tanh %120 : vector<2x32xf32>
    %cst_23 = arith.constant 1.000000e+00 : f32
    %122 = vector.broadcast %cst_23 : f32 to vector<2x32xf32>
    %123 = arith.subf %122, %116 : vector<2x32xf32>
    %124 = arith.mulf %123, %121 : vector<2x32xf32>
    %125 = arith.mulf %116, %97 : vector<2x32xf32>
    %126 = arith.addf %124, %125 : vector<2x32xf32>
    %127 = vector.extract_strided_slice %5 {offsets = [8, 0], sizes = [2, 96], strides = [1, 1]} : vector<16x96xf32> to vector<2x96xf32>
    %cst_24 = arith.constant dense<0.000000e+00> : vector<2x96xf32>
    %128 = tpu.matmul %126, %6, %cst_24 {dimension_numbers = #tpu.dot_dimension_numbers<[1], [0], [0], [1], [0, 0, 1, 1], [], []>} : vector<2x32xf32>, vector<32x96xf32>, vector<2x96xf32> -> vector<2x96xf32>
    %129 = arith.addf %128, %9 : vector<2x96xf32>
    %130 = vector.extract_strided_slice %127 {offsets = [0, 0], sizes = [2, 32], strides = [1, 1]} : vector<2x96xf32> to vector<2x32xf32>
    %131 = vector.extract_strided_slice %129 {offsets = [0, 0], sizes = [2, 32], strides = [1, 1]} : vector<2x96xf32> to vector<2x32xf32>
    %132 = arith.addf %130, %131 : vector<2x32xf32>
    %133 = arith.negf %132 : vector<2x32xf32>
    %134 = math.exp %133 : vector<2x32xf32>
    %cst_25 = arith.constant 1.000000e+00 : f32
    %135 = vector.broadcast %cst_25 : f32 to vector<2x32xf32>
    %136 = arith.addf %135, %134 : vector<2x32xf32>
    %137 = arith.divf %135, %136 : vector<2x32xf32>
    %138 = vector.extract_strided_slice %127 {offsets = [0, 32], sizes = [2, 32], strides = [1, 1]} : vector<2x96xf32> to vector<2x32xf32>
    %139 = vector.extract_strided_slice %129 {offsets = [0, 32], sizes = [2, 32], strides = [1, 1]} : vector<2x96xf32> to vector<2x32xf32>
    %140 = arith.addf %138, %139 : vector<2x32xf32>
    %141 = arith.negf %140 : vector<2x32xf32>
    %142 = math.exp %141 : vector<2x32xf32>
    %cst_26 = arith.constant 1.000000e+00 : f32
    %143 = vector.broadcast %cst_26 : f32 to vector<2x32xf32>
    %144 = arith.addf %143, %142 : vector<2x32xf32>
    %145 = arith.divf %143, %144 : vector<2x32xf32>
    %146 = vector.extract_strided_slice %127 {offsets = [0, 64], sizes = [2, 32], strides = [1, 1]} : vector<2x96xf32> to vector<2x32xf32>
    %147 = vector.extract_strided_slice %129 {offsets = [0, 64], sizes = [2, 32], strides = [1, 1]} : vector<2x96xf32> to vector<2x32xf32>
    %148 = arith.mulf %137, %147 : vector<2x32xf32>
    %149 = arith.addf %146, %148 : vector<2x32xf32>
    %150 = math.tanh %149 : vector<2x32xf32>
    %cst_27 = arith.constant 1.000000e+00 : f32
    %151 = vector.broadcast %cst_27 : f32 to vector<2x32xf32>
    %152 = arith.subf %151, %145 : vector<2x32xf32>
    %153 = arith.mulf %152, %150 : vector<2x32xf32>
    %154 = arith.mulf %145, %126 : vector<2x32xf32>
    %155 = arith.addf %153, %154 : vector<2x32xf32>
    %156 = vector.extract_strided_slice %5 {offsets = [10, 0], sizes = [2, 96], strides = [1, 1]} : vector<16x96xf32> to vector<2x96xf32>
    %cst_28 = arith.constant dense<0.000000e+00> : vector<2x96xf32>
    %157 = tpu.matmul %155, %6, %cst_28 {dimension_numbers = #tpu.dot_dimension_numbers<[1], [0], [0], [1], [0, 0, 1, 1], [], []>} : vector<2x32xf32>, vector<32x96xf32>, vector<2x96xf32> -> vector<2x96xf32>
    %158 = arith.addf %157, %9 : vector<2x96xf32>
    %159 = vector.extract_strided_slice %156 {offsets = [0, 0], sizes = [2, 32], strides = [1, 1]} : vector<2x96xf32> to vector<2x32xf32>
    %160 = vector.extract_strided_slice %158 {offsets = [0, 0], sizes = [2, 32], strides = [1, 1]} : vector<2x96xf32> to vector<2x32xf32>
    %161 = arith.addf %159, %160 : vector<2x32xf32>
    %162 = arith.negf %161 : vector<2x32xf32>
    %163 = math.exp %162 : vector<2x32xf32>
    %cst_29 = arith.constant 1.000000e+00 : f32
    %164 = vector.broadcast %cst_29 : f32 to vector<2x32xf32>
    %165 = arith.addf %164, %163 : vector<2x32xf32>
    %166 = arith.divf %164, %165 : vector<2x32xf32>
    %167 = vector.extract_strided_slice %156 {offsets = [0, 32], sizes = [2, 32], strides = [1, 1]} : vector<2x96xf32> to vector<2x32xf32>
    %168 = vector.extract_strided_slice %158 {offsets = [0, 32], sizes = [2, 32], strides = [1, 1]} : vector<2x96xf32> to vector<2x32xf32>
    %169 = arith.addf %167, %168 : vector<2x32xf32>
    %170 = arith.negf %169 : vector<2x32xf32>
    %171 = math.exp %170 : vector<2x32xf32>
    %cst_30 = arith.constant 1.000000e+00 : f32
    %172 = vector.broadcast %cst_30 : f32 to vector<2x32xf32>
    %173 = arith.addf %172, %171 : vector<2x32xf32>
    %174 = arith.divf %172, %173 : vector<2x32xf32>
    %175 = vector.extract_strided_slice %156 {offsets = [0, 64], sizes = [2, 32], strides = [1, 1]} : vector<2x96xf32> to vector<2x32xf32>
    %176 = vector.extract_strided_slice %158 {offsets = [0, 64], sizes = [2, 32], strides = [1, 1]} : vector<2x96xf32> to vector<2x32xf32>
    %177 = arith.mulf %166, %176 : vector<2x32xf32>
    %178 = arith.addf %175, %177 : vector<2x32xf32>
    %179 = math.tanh %178 : vector<2x32xf32>
    %cst_31 = arith.constant 1.000000e+00 : f32
    %180 = vector.broadcast %cst_31 : f32 to vector<2x32xf32>
    %181 = arith.subf %180, %174 : vector<2x32xf32>
    %182 = arith.mulf %181, %179 : vector<2x32xf32>
    %183 = arith.mulf %174, %155 : vector<2x32xf32>
    %184 = arith.addf %182, %183 : vector<2x32xf32>
    %185 = vector.extract_strided_slice %5 {offsets = [12, 0], sizes = [2, 96], strides = [1, 1]} : vector<16x96xf32> to vector<2x96xf32>
    %cst_32 = arith.constant dense<0.000000e+00> : vector<2x96xf32>
    %186 = tpu.matmul %184, %6, %cst_32 {dimension_numbers = #tpu.dot_dimension_numbers<[1], [0], [0], [1], [0, 0, 1, 1], [], []>} : vector<2x32xf32>, vector<32x96xf32>, vector<2x96xf32> -> vector<2x96xf32>
    %187 = arith.addf %186, %9 : vector<2x96xf32>
    %188 = vector.extract_strided_slice %185 {offsets = [0, 0], sizes = [2, 32], strides = [1, 1]} : vector<2x96xf32> to vector<2x32xf32>
    %189 = vector.extract_strided_slice %187 {offsets = [0, 0], sizes = [2, 32], strides = [1, 1]} : vector<2x96xf32> to vector<2x32xf32>
    %190 = arith.addf %188, %189 : vector<2x32xf32>
    %191 = arith.negf %190 : vector<2x32xf32>
    %192 = math.exp %191 : vector<2x32xf32>
    %cst_33 = arith.constant 1.000000e+00 : f32
    %193 = vector.broadcast %cst_33 : f32 to vector<2x32xf32>
    %194 = arith.addf %193, %192 : vector<2x32xf32>
    %195 = arith.divf %193, %194 : vector<2x32xf32>
    %196 = vector.extract_strided_slice %185 {offsets = [0, 32], sizes = [2, 32], strides = [1, 1]} : vector<2x96xf32> to vector<2x32xf32>
    %197 = vector.extract_strided_slice %187 {offsets = [0, 32], sizes = [2, 32], strides = [1, 1]} : vector<2x96xf32> to vector<2x32xf32>
    %198 = arith.addf %196, %197 : vector<2x32xf32>
    %199 = arith.negf %198 : vector<2x32xf32>
    %200 = math.exp %199 : vector<2x32xf32>
    %cst_34 = arith.constant 1.000000e+00 : f32
    %201 = vector.broadcast %cst_34 : f32 to vector<2x32xf32>
    %202 = arith.addf %201, %200 : vector<2x32xf32>
    %203 = arith.divf %201, %202 : vector<2x32xf32>
    %204 = vector.extract_strided_slice %185 {offsets = [0, 64], sizes = [2, 32], strides = [1, 1]} : vector<2x96xf32> to vector<2x32xf32>
    %205 = vector.extract_strided_slice %187 {offsets = [0, 64], sizes = [2, 32], strides = [1, 1]} : vector<2x96xf32> to vector<2x32xf32>
    %206 = arith.mulf %195, %205 : vector<2x32xf32>
    %207 = arith.addf %204, %206 : vector<2x32xf32>
    %208 = math.tanh %207 : vector<2x32xf32>
    %cst_35 = arith.constant 1.000000e+00 : f32
    %209 = vector.broadcast %cst_35 : f32 to vector<2x32xf32>
    %210 = arith.subf %209, %203 : vector<2x32xf32>
    %211 = arith.mulf %210, %208 : vector<2x32xf32>
    %212 = arith.mulf %203, %184 : vector<2x32xf32>
    %213 = arith.addf %211, %212 : vector<2x32xf32>
    %214 = vector.extract_strided_slice %5 {offsets = [14, 0], sizes = [2, 96], strides = [1, 1]} : vector<16x96xf32> to vector<2x96xf32>
    %cst_36 = arith.constant dense<0.000000e+00> : vector<2x96xf32>
    %215 = tpu.matmul %213, %6, %cst_36 {dimension_numbers = #tpu.dot_dimension_numbers<[1], [0], [0], [1], [0, 0, 1, 1], [], []>} : vector<2x32xf32>, vector<32x96xf32>, vector<2x96xf32> -> vector<2x96xf32>
    %216 = arith.addf %215, %9 : vector<2x96xf32>
    %217 = vector.extract_strided_slice %214 {offsets = [0, 0], sizes = [2, 32], strides = [1, 1]} : vector<2x96xf32> to vector<2x32xf32>
    %218 = vector.extract_strided_slice %216 {offsets = [0, 0], sizes = [2, 32], strides = [1, 1]} : vector<2x96xf32> to vector<2x32xf32>
    %219 = arith.addf %217, %218 : vector<2x32xf32>
    %220 = arith.negf %219 : vector<2x32xf32>
    %221 = math.exp %220 : vector<2x32xf32>
    %cst_37 = arith.constant 1.000000e+00 : f32
    %222 = vector.broadcast %cst_37 : f32 to vector<2x32xf32>
    %223 = arith.addf %222, %221 : vector<2x32xf32>
    %224 = arith.divf %222, %223 : vector<2x32xf32>
    %225 = vector.extract_strided_slice %214 {offsets = [0, 32], sizes = [2, 32], strides = [1, 1]} : vector<2x96xf32> to vector<2x32xf32>
    %226 = vector.extract_strided_slice %216 {offsets = [0, 32], sizes = [2, 32], strides = [1, 1]} : vector<2x96xf32> to vector<2x32xf32>
    %227 = arith.addf %225, %226 : vector<2x32xf32>
    %228 = arith.negf %227 : vector<2x32xf32>
    %229 = math.exp %228 : vector<2x32xf32>
    %cst_38 = arith.constant 1.000000e+00 : f32
    %230 = vector.broadcast %cst_38 : f32 to vector<2x32xf32>
    %231 = arith.addf %230, %229 : vector<2x32xf32>
    %232 = arith.divf %230, %231 : vector<2x32xf32>
    %233 = vector.extract_strided_slice %214 {offsets = [0, 64], sizes = [2, 32], strides = [1, 1]} : vector<2x96xf32> to vector<2x32xf32>
    %234 = vector.extract_strided_slice %216 {offsets = [0, 64], sizes = [2, 32], strides = [1, 1]} : vector<2x96xf32> to vector<2x32xf32>
    %235 = arith.mulf %224, %234 : vector<2x32xf32>
    %236 = arith.addf %233, %235 : vector<2x32xf32>
    %237 = math.tanh %236 : vector<2x32xf32>
    %cst_39 = arith.constant 1.000000e+00 : f32
    %238 = vector.broadcast %cst_39 : f32 to vector<2x32xf32>
    %239 = arith.subf %238, %232 : vector<2x32xf32>
    %240 = arith.mulf %239, %237 : vector<2x32xf32>
    %241 = arith.mulf %232, %213 : vector<2x32xf32>
    %242 = arith.addf %240, %241 : vector<2x32xf32>
    %c2 = arith.constant 2 : index
    %c0_40 = arith.constant 0 : index
    %243 = vector.load %arg3[%c2, %c0_40] : memref<3x128xf32, #tpu.memory_space<vmem>>, vector<1x128xf32>
    %c0_41 = arith.constant 0 : index
    %c0_42 = arith.constant 0 : index
    %244 = vector.load %arg2[%c0_41, %c0_42] : memref<32x128xf32, #tpu.memory_space<vmem>>, vector<32x128xf32>
    %cst_43 = arith.constant dense<0.000000e+00> : vector<2x128xf32>
    %245 = tpu.matmul %242, %244, %cst_43 {dimension_numbers = #tpu.dot_dimension_numbers<[1], [0], [0], [1], [0, 0, 1, 1], [], []>} : vector<2x32xf32>, vector<32x128xf32>, vector<2x128xf32> -> vector<2x128xf32>
    %246 = vector.broadcast %243 : vector<1x128xf32> to vector<2x128xf32>
    %247 = arith.addf %245, %246 : vector<2x128xf32>
    %c0_44 = arith.constant 0 : index
    %c0_45 = arith.constant 0 : index
    %248 = vector.load %arg4[%c0_44, %c0_45] : memref<2x128xf32, #tpu.memory_space<vmem>>, vector<2x128xf32>
    tpu.vector_store %arg4[%c0_44, %c0_45], %247 {strides = array<i32>} : memref<2x128xf32, #tpu.memory_space<vmem>>, vector<2x128xf32>,
    return
  }
}

</mosaic_0001>

<bundles_post_ra>
// kernel: tpu_custom_call.1
= control target key start
LH: loop header
LB: loop body
LE: loop exit
PB: predicated region body
PF: predicated region fallthrough
CT: control target
= control target key end

     0   :  { %9 = vsyncpa [#allocation3], 0  ;;  %s1048_s0 = inlined_call_operand.hbm [shape: f32[16,32], index: 0, kind: input, shape index: {}]   ;;  %s1049_s1 = inlined_call_operand.hbm [shape: f32[64,96], index: 1, kind: input, shape index: {}]   ;;  %s1050_s2 = inlined_call_operand.hbm [shape: f32[32,128], index: 2, kind: input, shape index: {}]   ;;  %s1051_s3 = inlined_call_operand.hbm [shape: f32[3,128], index: 3, kind: input, shape index: {}]   ;;  %s1052_s4 = inlined_call_operand.hbm [shape: f32[2,128], index: 4, kind: output, shape index: {}]  }
   0x1   :  { %10 = vsyncpa [#allocation6], 0 }
   0x2   :  { %11 = vsyncpa [#allocation9], 0 }
   0x3   :  { %12 = vsyncpa [#allocation4], 0  ;;  %s30_s17 = sshll.u32 %s1049_s1, 4  ;;  %s922_s18 = smov [#allocation5]   ;;  %s31_s17 = int_to_ptr.hbm [resolvable:$true] %s30_s17 }
   0x4   :  { %s32_s19 = sshll.u32 %s922_s18, 4  ;;  %s17_s22 = sshll.u32 %s1048_s0, 4  ;;  %s33_s19 = int_to_ptr.vmem [resolvable:$true] %s32_s19  ;;  %s18_s22 = int_to_ptr.hbm [resolvable:$true] %s17_s22 }
   0x5   :  { %s923_s23 = smov 128   ;;  %s924_s24 = smov 8  }
   0x6   :  { %38 = dma.hbm_to_vmem [thread:$0]  %s31_s17, 1024, %s33_s19, [#allocation6], %s923_s23, %s923_s23, %s924_s24  }
   0x7   :  { %s925_s25 = smov [#allocation2]   ;;  %s43_s29 = sshll.u32 %s1050_s2, 4  ;;  %s44_s29 = int_to_ptr.hbm [resolvable:$true] %s43_s29 }
   0x8   :  { %s19_s26 = sshll.u32 %s925_s25, 4  ;;  %s57_s5 = sshll.u32 %s1051_s3, 4  ;;  %s20_s26 = int_to_ptr.vmem [resolvable:$true] %s19_s26  ;;  %s58_s5 = int_to_ptr.hbm [resolvable:$true] %s57_s5 }
   0x9   :  { %25 = dma.hbm_to_vmem [thread:$0]  %s18_s22, 256, %s20_s26, [#allocation3], %s923_s23, %s923_s23, %s924_s24  }
   0xa   :  { %s926_s6 = smov [#allocation7]   ;;  %s927_s0 = smov [#allocation8]  }
   0xb   :  { %s45_s7 = sshll.u32 %s926_s6, 4  ;;  %s59_s8 = sshll.u32 %s927_s0, 4  ;;  %s46_s7 = int_to_ptr.vmem [resolvable:$true] %s45_s7  ;;  %s60_s8 = int_to_ptr.vmem [resolvable:$true] %s59_s8 }
   0xc   :  { %51 = dma.hbm_to_vmem [thread:$0]  %s44_s29, 512, %s46_s7, [#allocation6], %s923_s23, %s923_s23, %s924_s24  }
   0xd   :  { %62 = dma.hbm_to_vmem [thread:$0]  %s58_s5, 64, %s60_s8, [#allocation9]  }
   0xe   :  { %914 = dma.done.wait [#allocation3], 256  }
   0xf   :  { %915 = vsyncadd [#allocation3], 4294967040 }
  0x10   :  { %916 = dma.done.wait [#allocation6], 1536  }
  0x11   :  { %917 = vsyncadd [#allocation6], 4294965760 }
  0x12   :  { %918 = dma.done.wait [#allocation9], 64  }
  0x13   :  { %919 = vsyncadd [#allocation9], 4294967232  ;;  %v85_v0 = vld [vmem:[#allocation5 + $0x18] sm:$0xff]  ;;  %v84_v2 = vld [vmem:[#allocation5 + $0x10] sm:$0xff]  ;;  %vm87_vm0 = vcmask 261120   ;;  %v928_v9 = vmov 0.0  }
  0x14   :  { %v120_v1 = vld [vmem:[#allocation5 + $0x38] sm:$0xff]  ;;  %106 = vmatpush.msra.mxu0 %v85_v0  ;;  %v119_v3 = vld [vmem:[#allocation5 + $0x30] sm:$0xff]  ;;  %v83_v4 = vld [vmem:[#allocation5 + $0x8] sm:$0xff]  ;;  %s929_s2 = smov 64   ;;  %s930_s3 = smov 96  }
  0x15   :  { %138 = vmatpush.msra.mxu1 %v120_v1  ;;  %v118_v5 = vld [vmem:[#allocation5 + $0x28] sm:$0xff]  ;;  %202 = vmatpush.msra.mxu2 %v120_v1  ;;  %v82_v6 = vld [vmem:[#allocation5] sm:$0xff]  ;;  %v80_v8 = vld [vmem:[#allocation2] sm:$0xff]  ;;  %s931_s9 = smov [#allocation10]   ;;  %s703_s13 = sshll.u32 %s1052_s4, 4  ;;  %s704_s13 = int_to_ptr.hbm [resolvable:$true] %s703_s13 }
  0x16   :  { %271 = vmatpush.msra.mxu3 %v120_v1  ;;  %107 = vmatpush.msra.mxu0 %v84_v2  ;;  %v117_v7 = vld [vmem:[#allocation5 + $0x20] sm:$0xff]  ;;  %s701_s10 = sshll.u32 %s931_s9, 4  ;;  %s702_s10 = int_to_ptr.vmem [resolvable:$true] %s701_s10 }
  0x17   :  { %139 = vmatpush.msra.mxu1 %v119_v3  ;;  %203 = vmatpush.msra.mxu2 %v119_v3  ;;  %v970_v10 = vld [vmem:[#allocation8 + $0x1] ss:$0 sm:$0xff]  ;;  %v974_v13 = vld [vmem:[#allocation8] ss:$0 sm:$0xff] }
  0x18   :  { %272 = vmatpush.msra.mxu3 %v119_v3  ;;  %108 = vmatpush.msra.mxu0 %v83_v4 }
  0x19   :  { %140 = vmatpush.msra.mxu1 %v118_v5  ;;  %204 = vmatpush.msra.mxu2 %v118_v5 }
  0x1a   :  { %273 = vmatpush.msra.mxu3 %v118_v5  ;;  %109 = vmatpush.msra.mxu0 %v82_v6 }
  0x1b   :  { %141 = vmatpush.msra.mxu1 %v117_v7  ;;  %715 = vmatmul.msk.f32.vlgmr.msra.gmra.mxu0 %vm87_vm0, %v80_v8 }
  0x1c   :  { %142 = vmatmul.f32.vlgmr.msra.gmra.mxu1 %v928_v9  ;;  %205 = vmatpush.msra.mxu2 %v117_v7 }
  0x1d   :  { %274 = vmatpush.msra.mxu3 %v117_v7  ;;  %340 = vmatpush.msrb.mxu1 %v120_v1 }
  0x1e   :  { %409 = vmatpush.msrb.mxu2 %v120_v1  ;;  %543 = vmatpush.msrb.mxu0 %v120_v1 }
  0x1f   :  { %474 = vmatpush.msrb.mxu3 %v120_v1  ;;  %341 = vmatpush.msrb.mxu1 %v119_v3 }
  0x20   :  { %410 = vmatpush.msrb.mxu2 %v119_v3  ;;  %544 = vmatpush.msrb.mxu0 %v119_v3 }
  0x21   :  { %475 = vmatpush.msrb.mxu3 %v119_v3  ;;  %342 = vmatpush.msrb.mxu1 %v118_v5 }
  0x22   :  { %411 = vmatpush.msrb.mxu2 %v118_v5  ;;  %545 = vmatpush.msrb.mxu0 %v118_v5 }
  0x23   :  { %476 = vmatpush.msrb.mxu3 %v118_v5  ;;  %343 = vmatpush.msrb.mxu1 %v117_v7 }
  0x24   :  { %412 = vmatpush.msrb.mxu2 %v117_v7  ;;  %546 = vmatpush.msrb.mxu0 %v117_v7 }
  0x25   :  { %477 = vmatpush.msrb.mxu3 %v117_v7  ;;  %612 = vmatpush.msra.mxu1 %v120_v1 }
  0x27   :  { %613 = vmatpush.msra.mxu1 %v119_v3 }
  0x29   :  { %614 = vmatpush.msra.mxu1 %v118_v5 }
  0x2b   :  { %615 = vmatpush.msra.mxu1 %v117_v7 }
  0x98   :  { %v111_v14 = vpop.f32.mrf.mxu0 }
  0x99   :  { %v143_v11 = vpop.f32.mrf.mxu1  ;;  %v977_v15 = vadd.f32 %v974_v13, %v111_v14 }
  0x9a   :  { %v144_v12 = vadd.f32 %v970_v10, %v143_v11 }
  0x9c   :  { %167 = vrot.lane.b32.xlu0 %v144_v12, %s929_s2  ;;  %v146_v16 = vadd.f32 %v144_v12, %v977_v15 }
  0x9e   :  { %v717_v17 = vmul.f32 -1.442695, %v146_v16 }
  0xa0   :  { %746 = vpow2.f32 %v717_v17 }
  0xa6   :  { %v747_v18 = vpop.eup %746 }
  0xa7   :  { %v150_v19 = vadd.f32 1.0, %v747_v18 }
  0xa9   :  { %748 = vrcp.f32 %v150_v19  ;;  %v162_v25 = vand.u32 2147483648, %v150_v19  ;;  %vm156_vm2 = vweird.f32 %v150_v19  ;;  %v160_v26 = vand.u32 2147483647, %v150_v19 }
  0xab   :  { %v163_v28 = vor.u32 1.1754944e-38, %v162_v25  ;;  %vm161_vm4 = vcmp.eq.f32.partialorder %v160_v26, 8.507059e+37 }
  0xaf   :  { %v749_v20 = vpop.eup %748 }
  0xb0   :  { %v152_v21 = vmul.f32 %v749_v20, %v150_v19  ;;  %vm157_vm1 = vweird.f32 %v749_v20 }
  0xb1   :  { %vm158_vm3 = vmor %vm156_vm2, %vm157_vm1 }
  0xb2   :  { %v153_v22 = vsub.f32 1.0, %v152_v21 }
  0xb4   :  { %v154_v23 = vmul.f32 %v749_v20, %v153_v22 }
  0xb6   :  { %v155_v24 = vadd.f32 %v749_v20, %v154_v23 }
  0xb8   :  { %v159_v27 = vsel %vm158_vm3, %v749_v20, %v155_v24 }
  0xb9   :  { %v164_v30 = vsel %vm161_vm4, %v163_v28, %v159_v27 }
  0xba   :  { %v177_v35 = vsub.f32 1.0, %v164_v30  ;;  %v183_v37 = vmul.f32 0.0, %v164_v30 }
 0x10e   :  { %v168_v29 = vpop.permute.xlu0 %167 }
 0x10f   :  { %v170_v31 = vmul.f32 %v168_v29, %v164_v30 }
 0x111   :  { %172 = vrot.lane.b32.xlu0 %v170_v31, %s929_s2 }
 0x183   :  { %v173_v32 = vpop.permute.xlu0 %172 }
 0x184   :  { %v175_v33 = vadd.f32 %v173_v32, %v977_v15 }
 0x186   :  { %750 = vtanh.f32 %v175_v33 }
 0x18c   :  { %v751_v34 = vpop.eup %750 }
 0x18d   :  { %179 = vrot.lane.b32.xlu1 %v751_v34, %s930_s3 }
 0x1ff   :  { %v180_v36 = vpop.permute.xlu1 %179 }
 0x200   :  { %v182_v38 = vmul.f32 %v180_v36, %v177_v35 }
 0x202   :  { %v184_v39 = vadd.f32 %v183_v37, %v182_v38 }
 0x204   :  { %186 = vrot.lane.b32.xlu1 %v184_v39, %s930_s3  ;;  %v249_v56 = vrot.slane %v184_v39, 6 }
 0x276   :  { %v187_v40 = vpop.permute.xlu1 %186 }
 0x277   :  { %718 = vmatmul.msk.f32.vlgmr.msra.gmra.mxu2 %vm87_vm0, %v187_v40 }
 0x2fa   :  { %v207_v41 = vpop.f32.mrf.mxu2 }
 0x2fb   :  { %v208_v42 = vadd.f32 %v970_v10, %v207_v41 }
 0x2fd   :  { %v211_v43 = vrot.slane %v208_v42, 6 }
 0x2ff   :  { %v213_v44 = vadd.f32 %v211_v43, %v977_v15  ;;  %233 = vrot.lane.b32.xlu2 %v211_v43, %s929_s2 }
 0x301   :  { %v719_v45 = vmul.f32 -1.442695, %v213_v44 }
 0x303   :  { %752 = vpow2.f32 %v719_v45 }
 0x309   :  { %v753_v46 = vpop.eup %752 }
 0x30a   :  { %v217_v47 = vadd.f32 1.0, %v753_v46 }
 0x30c   :  { %754 = vrcp.f32 %v217_v47  ;;  %v229_v51 = vand.u32 2147483648, %v217_v47  ;;  %v227_v53 = vand.u32 2147483647, %v217_v47  ;;  %vm223_vm6 = vweird.f32 %v217_v47 }
 0x30e   :  { %v230_v55 = vor.u32 1.1754944e-38, %v229_v51  ;;  %vm228_vm8 = vcmp.eq.f32.partialorder %v227_v53, 8.507059e+37 }
 0x312   :  { %v755_v48 = vpop.eup %754 }
 0x313   :  { %v219_v49 = vmul.f32 %v755_v48, %v217_v47  ;;  %vm224_vm5 = vweird.f32 %v755_v48 }
 0x314   :  { %vm225_vm7 = vmor %vm223_vm6, %vm224_vm5 }
 0x315   :  { %v220_v50 = vsub.f32 1.0, %v219_v49 }
 0x317   :  { %v221_v52 = vmul.f32 %v755_v48, %v220_v50 }
 0x319   :  { %v222_v54 = vadd.f32 %v755_v48, %v221_v52 }
 0x31b   :  { %v226_v57 = vsel %vm225_vm7, %v755_v48, %v222_v54 }
 0x31c   :  { %v231_v58 = vsel %vm228_vm8, %v230_v55, %v226_v57 }
 0x31d   :  { %v251_v59 = vmul.f32 %v249_v56, %v231_v58  ;;  %v243_v1 = vsub.f32 1.0, %v231_v58 }
 0x359   :  { %v234_v60 = vpop.permute.xlu2 %233 }
 0x35a   :  { %v236_v61 = vmul.f32 %v234_v60, %v231_v58 }
 0x35c   :  { %238 = vrot.lane.b32.xlu2 %v236_v61, %s929_s2 }
 0x3b6   :  { %v239_v62 = vpop.permute.xlu2 %238 }
 0x3b7   :  { %v241_v63 = vadd.f32 %v239_v62, %v977_v15 }
 0x3b9   :  { %756 = vtanh.f32 %v241_v63 }
 0x3bf   :  { %v757_v0 = vpop.eup %756 }
 0x3c0   :  { %245 = vrot.lane.b32.xlu0 %v757_v0, %s930_s3 }
 0x432   :  { %v246_v2 = vpop.permute.xlu0 %245 }
 0x433   :  { %v248_v3 = vmul.f32 %v246_v2, %v243_v1 }
 0x435   :  { %v252_v4 = vadd.f32 %v251_v59, %v248_v3 }
 0x437   :  { %v254_v5 = vrot.slane %v252_v4, 2  ;;  %v318_v25 = vrot.slane %v252_v4, 6 }
 0x439   :  { %255 = vrot.lane.b32.xlu1 %v254_v5, %s930_s3  ;;  %v81_v5 = vld [vmem:[#allocation2 + $0x8] sm:$0xff] }
 0x43a   :  { %716 = vmatmul.msk.f32.gmra.mxu0 %vm87_vm0, %v81_v5 }
 0x4ab   :  { %v256_v6 = vpop.permute.xlu1 %255 }
 0x4ac   :  { %720 = vmatmul.msk.f32.vlgmr.msra.gmra.mxu3 %vm87_vm0, %v256_v6 }
 0x52f   :  { %v276_v7 = vpop.f32.mrf.mxu3 }
 0x530   :  { %v277_v8 = vadd.f32 %v970_v10, %v276_v7 }
 0x532   :  { %v280_v9 = vrot.slane %v277_v8, 4  ;;  %v114_v8 = vpop.f32.mrf.mxu0 }
 0x534   :  { %v282_v11 = vadd.f32 %v280_v9, %v977_v15  ;;  %302 = vrot.lane.b32.xlu2 %v280_v9, %s929_s2  ;;  %v1013_v9 = vadd.f32 %v974_v13, %v114_v8 }
 0x536   :  { %v721_v12 = vmul.f32 -1.442695, %v282_v11 }
 0x538   :  { %758 = vpow2.f32 %v721_v12 }
 0x53e   :  { %v759_v14 = vpop.eup %758 }
 0x53f   :  { %v286_v16 = vadd.f32 1.0, %v759_v14 }
 0x541   :  { %760 = vrcp.f32 %v286_v16  ;;  %v298_v20 = vand.u32 2147483648, %v286_v16  ;;  %v296_v22 = vand.u32 2147483647, %v286_v16  ;;  %vm292_vm10 = vweird.f32 %v286_v16 }
 0x543   :  { %v299_v24 = vor.u32 1.1754944e-38, %v298_v20  ;;  %vm297_vm12 = vcmp.eq.f32.partialorder %v296_v22, 8.507059e+37 }
 0x547   :  { %v761_v17 = vpop.eup %760 }
 0x548   :  { %v288_v18 = vmul.f32 %v761_v17, %v286_v16  ;;  %vm293_vm9 = vweird.f32 %v761_v17 }
 0x549   :  { %vm294_vm11 = vmor %vm292_vm10, %vm293_vm9 }
 0x54a   :  { %v289_v19 = vsub.f32 1.0, %v288_v18 }
 0x54c   :  { %v290_v21 = vmul.f32 %v761_v17, %v289_v19 }
 0x54e   :  { %v291_v23 = vadd.f32 %v761_v17, %v290_v21 }
 0x550   :  { %v295_v26 = vsel %vm294_vm11, %v761_v17, %v291_v23 }
 0x551   :  { %v300_v27 = vsel %vm297_vm12, %v299_v24, %v295_v26 }
 0x552   :  { %v320_v28 = vmul.f32 %v318_v25, %v300_v27  ;;  %v312_v34 = vsub.f32 1.0, %v300_v27 }
 0x58e   :  { %v303_v29 = vpop.permute.xlu2 %302 }
 0x58f   :  { %v305_v30 = vmul.f32 %v303_v29, %v300_v27 }
 0x591   :  { %307 = vrot.lane.b32.xlu0 %v305_v30, %s929_s2 }
 0x603   :  { %v308_v31 = vpop.permute.xlu0 %307 }
 0x604   :  { %v310_v32 = vadd.f32 %v308_v31, %v977_v15 }
 0x606   :  { %762 = vtanh.f32 %v310_v32 }
 0x60c   :  { %v763_v33 = vpop.eup %762 }
 0x60d   :  { %314 = vrot.lane.b32.xlu1 %v763_v33, %s930_s3 }
 0x67f   :  { %v315_v35 = vpop.permute.xlu1 %314 }
 0x680   :  { %v317_v36 = vmul.f32 %v315_v35, %v312_v34 }
 0x682   :  { %v321_v37 = vadd.f32 %v320_v28, %v317_v36 }
 0x684   :  { %v323_v38 = vrot.slane %v321_v37, 4  ;;  %v387_v62 = vrot.slane %v321_v37, 6 }
 0x686   :  { %324 = vrot.lane.b32.xlu2 %v323_v38, %s930_s3 }
 0x6e0   :  { %v325_v39 = vpop.permute.xlu2 %324 }
 0x6e1   :  { %722 = vmatmul.msk.f32.vlgmr.msrb.gmra.mxu1 %vm87_vm0, %v325_v39 }
 0x75e   :  { %v345_v40 = vpop.f32.mrf.mxu1 }
 0x75f   :  { %v346_v41 = vadd.f32 %v970_v10, %v345_v40 }
 0x761   :  { %v349_v42 = vrot.slane %v346_v41, 2 }
 0x763   :  { %371 = vrot.lane.b32.xlu0 %v349_v42, %s929_s2  ;;  %v351_v43 = vadd.f32 %v349_v42, %v977_v15 }
 0x765   :  { %v723_v44 = vmul.f32 -1.442695, %v351_v43 }
 0x767   :  { %764 = vpow2.f32 %v723_v44 }
 0x76d   :  { %v765_v45 = vpop.eup %764 }
 0x76e   :  { %v355_v46 = vadd.f32 1.0, %v765_v45 }
 0x770   :  { %766 = vrcp.f32 %v355_v46  ;;  %v367_v52 = vand.u32 2147483648, %v355_v46  ;;  %vm361_vm14 = vweird.f32 %v355_v46  ;;  %v365_v53 = vand.u32 2147483647, %v355_v46 }
 0x772   :  { %v368_v55 = vor.u32 1.1754944e-38, %v367_v52  ;;  %vm366_vm1 = vcmp.eq.f32.partialorder %v365_v53, 8.507059e+37 }
 0x776   :  { %v767_v47 = vpop.eup %766 }
 0x777   :  { %v357_v48 = vmul.f32 %v767_v47, %v355_v46  ;;  %vm362_vm13 = vweird.f32 %v767_v47 }
 0x778   :  { %vm363_vm15 = vmor %vm361_vm14, %vm362_vm13 }
 0x779   :  { %v358_v49 = vsub.f32 1.0, %v357_v48 }
 0x77b   :  { %v359_v50 = vmul.f32 %v767_v47, %v358_v49 }
 0x77d   :  { %v360_v51 = vadd.f32 %v767_v47, %v359_v50 }
 0x77f   :  { %v364_v54 = vsel %vm363_vm15, %v767_v47, %v360_v51 }
 0x780   :  { %v369_v57 = vsel %vm366_vm1, %v368_v55, %v364_v54 }
 0x781   :  { %v381_v63 = vsub.f32 1.0, %v369_v57  ;;  %v389_v1 = vmul.f32 %v387_v62, %v369_v57 }
 0x7d5   :  { %v372_v56 = vpop.permute.xlu0 %371 }
 0x7d6   :  { %v374_v58 = vmul.f32 %v372_v56, %v369_v57 }
 0x7d8   :  { %376 = vrot.lane.b32.xlu1 %v374_v58, %s929_s2 }
 0x84a   :  { %v377_v59 = vpop.permute.xlu1 %376 }
 0x84b   :  { %v379_v60 = vadd.f32 %v377_v59, %v977_v15 }
 0x84d   :  { %768 = vtanh.f32 %v379_v60 }
 0x853   :  { %v769_v61 = vpop.eup %768 }
 0x854   :  { %383 = vrot.lane.b32.xlu2 %v769_v61, %s930_s3 }
 0x8ae   :  { %v384_v0 = vpop.permute.xlu2 %383 }
 0x8af   :  { %v386_v2 = vmul.f32 %v384_v0, %v381_v63 }
 0x8b1   :  { %v390_v3 = vadd.f32 %v389_v1, %v386_v2 }
 0x8b3   :  { %v392_v4 = vrot.slane %v390_v3, 6 }
 0x8b5   :  { %393 = vrot.lane.b32.xlu0 %v392_v4, %s930_s3 }
 0x927   :  { %v394_v6 = vpop.permute.xlu0 %393 }
 0x928   :  { %724 = vmatmul.msk.f32.vlgmr.msrb.gmra.mxu2 %vm87_vm0, %v394_v6 }
 0x9ab   :  { %v414_v15 = vpop.f32.mrf.mxu2 }
 0x9ac   :  { %v415_v7 = vadd.f32 %v970_v10, %v414_v15 }
 0x9ae   :  { %438 = vrot.lane.b32.xlu1 %v415_v7, %s929_s2  ;;  %v417_v11 = vadd.f32 %v415_v7, %v1013_v9 }
 0x9b0   :  { %v725_v12 = vmul.f32 -1.442695, %v417_v11 }
 0x9b2   :  { %770 = vpow2.f32 %v725_v12 }
 0x9b8   :  { %v771_v14 = vpop.eup %770 }
 0x9b9   :  { %v421_v16 = vadd.f32 1.0, %v771_v14 }
 0x9bb   :  { %772 = vrcp.f32 %v421_v16  ;;  %v433_v22 = vand.u32 2147483648, %v421_v16  ;;  %vm427_vm3 = vweird.f32 %v421_v16  ;;  %v431_v23 = vand.u32 2147483647, %v421_v16 }
 0x9bd   :  { %v434_v13 = vor.u32 1.1754944e-38, %v433_v22  ;;  %vm432_vm5 = vcmp.eq.f32.partialorder %v431_v23, 8.507059e+37 }
 0x9c1   :  { %v773_v17 = vpop.eup %772 }
 0x9c2   :  { %v423_v18 = vmul.f32 %v773_v17, %v421_v16  ;;  %vm428_vm2 = vweird.f32 %v773_v17 }
 0x9c3   :  { %vm429_vm4 = vmor %vm427_vm3, %vm428_vm2 }
 0x9c4   :  { %v424_v19 = vsub.f32 1.0, %v423_v18 }
 0x9c6   :  { %v425_v20 = vmul.f32 %v773_v17, %v424_v19 }
 0x9c8   :  { %v426_v21 = vadd.f32 %v773_v17, %v425_v20 }
 0x9ca   :  { %v430_v24 = vsel %vm429_vm4, %v773_v17, %v426_v21 }
 0x9cb   :  { %v435_v26 = vsel %vm432_vm5, %v434_v13, %v430_v24 }
 0x9cc   :  { %v448_v31 = vsub.f32 1.0, %v435_v26  ;;  %v455_v33 = vmul.f32 %v435_v26, %v392_v4 }
 0xa20   :  { %v439_v25 = vpop.permute.xlu1 %438 }
 0xa21   :  { %v441_v27 = vmul.f32 %v439_v25, %v435_v26 }
 0xa23   :  { %443 = vrot.lane.b32.xlu2 %v441_v27, %s929_s2 }
 0xa7d   :  { %v444_v28 = vpop.permute.xlu2 %443 }
 0xa7e   :  { %v446_v29 = vadd.f32 %v444_v28, %v1013_v9 }
 0xa80   :  { %774 = vtanh.f32 %v446_v29 }
 0xa86   :  { %v775_v30 = vpop.eup %774 }
 0xa87   :  { %450 = vrot.lane.b32.xlu0 %v775_v30, %s930_s3 }
 0xaf9   :  { %v451_v32 = vpop.permute.xlu0 %450 }
 0xafa   :  { %v453_v34 = vmul.f32 %v451_v32, %v448_v31 }
 0xafc   :  { %v456_v35 = vadd.f32 %v455_v33, %v453_v34 }
 0xafe   :  { %458 = vrot.lane.b32.xlu1 %v456_v35, %s930_s3  ;;  %v521_v52 = vrot.slane %v456_v35, 6 }
 0xb70   :  { %v459_v36 = vpop.permute.xlu1 %458 }
 0xb71   :  { %726 = vmatmul.msk.f32.vlgmr.msrb.gmra.mxu3 %vm87_vm0, %v459_v36 }
 0xbf4   :  { %v479_v37 = vpop.f32.mrf.mxu3 }
 0xbf5   :  { %v480_v38 = vadd.f32 %v970_v10, %v479_v37 }
 0xbf7   :  { %v483_v39 = vrot.slane %v480_v38, 6 }
 0xbf9   :  { %v485_v40 = vadd.f32 %v483_v39, %v1013_v9  ;;  %505 = vrot.lane.b32.xlu2 %v483_v39, %s929_s2 }
 0xbfb   :  { %v727_v41 = vmul.f32 -1.442695, %v485_v40 }
 0xbfd   :  { %776 = vpow2.f32 %v727_v41 }
 0xc03   :  { %v777_v42 = vpop.eup %776 }
 0xc04   :  { %v489_v43 = vadd.f32 1.0, %v777_v42 }
 0xc06   :  { %778 = vrcp.f32 %v489_v43  ;;  %v501_v47 = vand.u32 2147483648, %v489_v43  ;;  %v499_v49 = vand.u32 2147483647, %v489_v43  ;;  %vm495_vm7 = vweird.f32 %v489_v43 }
 0xc08   :  { %v502_v51 = vor.u32 1.1754944e-38, %v501_v47  ;;  %vm500_vm9 = vcmp.eq.f32.partialorder %v499_v49, 8.507059e+37 }
 0xc0c   :  { %v779_v44 = vpop.eup %778 }
 0xc0d   :  { %v491_v45 = vmul.f32 %v779_v44, %v489_v43  ;;  %vm496_vm6 = vweird.f32 %v779_v44 }
 0xc0e   :  { %vm497_vm8 = vmor %vm495_vm7, %vm496_vm6 }
 0xc0f   :  { %v492_v46 = vsub.f32 1.0, %v491_v45 }
 0xc11   :  { %v493_v48 = vmul.f32 %v779_v44, %v492_v46 }
 0xc13   :  { %v494_v50 = vadd.f32 %v779_v44, %v493_v48 }
 0xc15   :  { %v498_v53 = vsel %vm497_vm8, %v779_v44, %v494_v50 }
 0xc16   :  { %v503_v54 = vsel %vm500_vm9, %v502_v51, %v498_v53 }
 0xc17   :  { %v523_v55 = vmul.f32 %v521_v52, %v503_v54  ;;  %v515_v61 = vsub.f32 1.0, %v503_v54 }
 0xc53   :  { %v506_v56 = vpop.permute.xlu2 %505 }
 0xc54   :  { %v508_v57 = vmul.f32 %v506_v56, %v503_v54  ;;  %v667_v56 = vld [vmem:[#allocation7 + $0x18] sm:$0xff] }
 0xc55   :  { %687 = vmatpush.msra.mxu2 %v667_v56 }
 0xc56   :  { %510 = vrot.lane.b32.xlu0 %v508_v57, %s929_s2  ;;  %v666_v57 = vld [vmem:[#allocation7 + $0x10] sm:$0xff] }
 0xc57   :  { %688 = vmatpush.msra.mxu2 %v666_v57 }
 0xcc8   :  { %v511_v58 = vpop.permute.xlu0 %510 }
 0xcc9   :  { %v513_v59 = vadd.f32 %v511_v58, %v1013_v9  ;;  %v665_v58 = vld [vmem:[#allocation7 + $0x8] sm:$0xff] }
 0xcca   :  { %689 = vmatpush.msra.mxu2 %v665_v58 }
 0xccb   :  { %780 = vtanh.f32 %v513_v59  ;;  %v664_v59 = vld [vmem:[#allocation7] sm:$0xff] }
 0xccc   :  { %690 = vmatpush.msra.mxu2 %v664_v59 }
 0xcd1   :  { %v781_v60 = vpop.eup %780 }
 0xcd2   :  { %517 = vrot.lane.b32.xlu1 %v781_v60, %s930_s3 }
 0xd44   :  { %v518_v62 = vpop.permute.xlu1 %517 }
 0xd45   :  { %v520_v63 = vmul.f32 %v518_v62, %v515_v61 }
 0xd47   :  { %v524_v0 = vadd.f32 %v523_v55, %v520_v63 }
 0xd49   :  { %v526_v1 = vrot.slane %v524_v0, 2  ;;  %v590_v27 = vrot.slane %v524_v0, 6 }
 0xd4b   :  { %527 = vrot.lane.b32.xlu2 %v526_v1, %s930_s3 }
 0xda5   :  { %v528_v2 = vpop.permute.xlu2 %527 }
 0xda6   :  { %728 = vmatmul.msk.f32.vlgmr.msrb.gmra.mxu0 %vm87_vm0, %v528_v2 }
 0xe23   :  { %v548_v3 = vpop.f32.mrf.mxu0 }
 0xe24   :  { %v549_v4 = vadd.f32 %v970_v10, %v548_v3  ;;  %v745_v3 = vld [vmem:[#allocation8 + $0x2] ss:$0 sm:$0xff] }
 0xe26   :  { %v552_v5 = vrot.slane %v549_v4, 4 }
 0xe28   :  { %574 = vrot.lane.b32.xlu0 %v552_v5, %s929_s2  ;;  %v554_v6 = vadd.f32 %v552_v5, %v1013_v9 }
 0xe2a   :  { %v729_v15 = vmul.f32 -1.442695, %v554_v6 }
 0xe2c   :  { %782 = vpow2.f32 %v729_v15 }
 0xe32   :  { %v783_v7 = vpop.eup %782 }
 0xe33   :  { %v558_v8 = vadd.f32 1.0, %v783_v7 }
 0xe35   :  { %784 = vrcp.f32 %v558_v8  ;;  %v570_v18 = vand.u32 2147483648, %v558_v8  ;;  %vm564_vm11 = vweird.f32 %v558_v8  ;;  %v568_v19 = vand.u32 2147483647, %v558_v8 }
 0xe37   :  { %v571_v21 = vor.u32 1.1754944e-38, %v570_v18  ;;  %vm569_vm13 = vcmp.eq.f32.partialorder %v568_v19, 8.507059e+37 }
 0xe3b   :  { %v785_v11 = vpop.eup %784 }
 0xe3c   :  { %v560_v12 = vmul.f32 %v785_v11, %v558_v8  ;;  %vm565_vm10 = vweird.f32 %v785_v11 }
 0xe3d   :  { %vm566_vm12 = vmor %vm564_vm11, %vm565_vm10 }
 0xe3e   :  { %v561_v14 = vsub.f32 1.0, %v560_v12 }
 0xe40   :  { %v562_v16 = vmul.f32 %v785_v11, %v561_v14 }
 0xe42   :  { %v563_v17 = vadd.f32 %v785_v11, %v562_v16 }
 0xe44   :  { %v567_v20 = vsel %vm566_vm12, %v785_v11, %v563_v17 }
 0xe45   :  { %v572_v23 = vsel %vm569_vm13, %v571_v21, %v567_v20 }
 0xe46   :  { %v584_v28 = vsub.f32 1.0, %v572_v23  ;;  %v592_v30 = vmul.f32 %v590_v27, %v572_v23 }
 0xe9a   :  { %v575_v22 = vpop.permute.xlu0 %574 }
 0xe9b   :  { %v577_v24 = vmul.f32 %v575_v22, %v572_v23 }
 0xe9d   :  { %579 = vrot.lane.b32.xlu1 %v577_v24, %s929_s2 }
 0xf0f   :  { %v580_v13 = vpop.permute.xlu1 %579 }
 0xf10   :  { %v582_v25 = vadd.f32 %v580_v13, %v1013_v9 }
 0xf12   :  { %786 = vtanh.f32 %v582_v25 }
 0xf18   :  { %v787_v26 = vpop.eup %786 }
 0xf19   :  { %586 = vrot.lane.b32.xlu2 %v787_v26, %s930_s3 }
 0xf73   :  { %v587_v29 = vpop.permute.xlu2 %586 }
 0xf74   :  { %v589_v31 = vmul.f32 %v587_v29, %v584_v28 }
 0xf76   :  { %v593_v32 = vadd.f32 %v592_v30, %v589_v31 }
 0xf78   :  { %v595_v33 = vrot.slane %v593_v32, 4  ;;  %v659_v60 = vrot.slane %v593_v32, 6 }
 0xf7a   :  { %596 = vrot.lane.b32.xlu0 %v595_v33, %s930_s3 }
 0xfec   :  { %v597_v34 = vpop.permute.xlu0 %596 }
 0xfed   :  { %730 = vmatmul.msk.f32.vlgmr.msra.gmra.mxu1 %vm87_vm0, %v597_v34 }
0x106a   :  { %v617_v35 = vpop.f32.mrf.mxu1 }
0x106b   :  { %v618_v36 = vadd.f32 %v970_v10, %v617_v35 }
0x106d   :  { %v621_v37 = vrot.slane %v618_v36, 2 }
0x106f   :  { %643 = vrot.lane.b32.xlu1 %v621_v37, %s929_s2  ;;  %v623_v38 = vadd.f32 %v621_v37, %v1013_v9 }
0x1071   :  { %v731_v39 = vmul.f32 -1.442695, %v623_v38 }
0x1073   :  { %788 = vpow2.f32 %v731_v39 }
0x1079   :  { %v789_v40 = vpop.eup %788 }
0x107a   :  { %v627_v41 = vadd.f32 1.0, %v789_v40 }
0x107c   :  { %790 = vrcp.f32 %v627_v41  ;;  %v639_v47 = vand.u32 2147483648, %v627_v41  ;;  %vm633_vm15 = vweird.f32 %v627_v41  ;;  %v637_v48 = vand.u32 2147483647, %v627_v41 }
0x107e   :  { %v640_v49 = vor.u32 1.1754944e-38, %v639_v47  ;;  %vm638_vm2 = vcmp.eq.f32.partialorder %v637_v48, 8.507059e+37 }
0x1082   :  { %v791_v42 = vpop.eup %790 }
0x1083   :  { %v629_v43 = vmul.f32 %v791_v42, %v627_v41  ;;  %vm634_vm14 = vweird.f32 %v791_v42 }
0x1084   :  { %vm635_vm1 = vmor %vm633_vm15, %vm634_vm14 }
0x1085   :  { %v630_v44 = vsub.f32 1.0, %v629_v43 }
0x1087   :  { %v631_v45 = vmul.f32 %v791_v42, %v630_v44 }
0x1089   :  { %v632_v46 = vadd.f32 %v791_v42, %v631_v45 }
0x108b   :  { %v636_v10 = vsel %vm635_vm1, %v791_v42, %v632_v46 }
0x108c   :  { %v641_v51 = vsel %vm638_vm2, %v640_v49, %v636_v10 }
0x108d   :  { %v653_v61 = vsub.f32 1.0, %v641_v51  ;;  %v661_v63 = vmul.f32 %v659_v60, %v641_v51 }
0x10e1   :  { %v644_v50 = vpop.permute.xlu1 %643 }
0x10e2   :  { %v646_v52 = vmul.f32 %v644_v50, %v641_v51 }
0x10e4   :  { %648 = vrot.lane.b32.xlu2 %v646_v52, %s929_s2 }
0x113e   :  { %v649_v53 = vpop.permute.xlu2 %648 }
0x113f   :  { %v651_v54 = vadd.f32 %v649_v53, %v1013_v9 }
0x1141   :  { %792 = vtanh.f32 %v651_v54 }
0x1147   :  { %v793_v55 = vpop.eup %792 }
0x1148   :  { %655 = vrot.lane.b32.xlu0 %v793_v55, %s930_s3 }
0x11ba   :  { %v656_v62 = vpop.permute.xlu0 %655 }
0x11bb   :  { %v658_v0 = vmul.f32 %v656_v62, %v653_v61 }
0x11bd   :  { %v662_v1 = vadd.f32 %v661_v63, %v658_v0 }
0x11bf   :  { %v670_v2 = vrot.slane %v662_v1, 6 }
0x11c1   :  { %671 = vrot.lane.b32.xlu1 %v670_v2, %s930_s3 }
0x1233   :  { %v672_v9 = vpop.permute.xlu1 %671 }
0x1234   :  { %732 = vmatmul.msk.f32.vlgmr.msra.gmra.mxu2 %vm87_vm0, %v672_v9 }
0x12b7   :  { %v692_v4 = vpop.f32.mrf.mxu2 }
0x12b8   :  { %v693_v5 = vadd.f32 %v745_v3, %v692_v4 }
0x12ba   :  { %695 = vst [vmem:[#allocation10] sm:$0x3] %v693_v5 }
0x12bb   :  { %706 = dma.vmem_to_hbm [thread:$0]  %s702_s10, 32, %s704_s13, [#allocation4]  }
0x12bc   :  { %920 = dma.done.wait [#allocation4], 32  }
0x12bd   :  { %921 = vsyncadd [#allocation4], 4294967264 }
0x12be   :  { %711 = vsyncpa [#allocation3], 1 }
0x12bf   :  { %712 = vsyncpa [#allocation6], 1 }
0x12c0   :  { %713 = vsyncpa [#allocation9], 1 }
0x12c1   :  { %714 = vsyncpa [#allocation4], 1 }

</bundles_post_ra>
